<compile_context>
chip_gen: v6e
topology: v6e:2x2x1
jax: 0.10.0
libtpu: 0.0.40
codegen_flags: <defaults>
</compile_context>

<pallas_src>
import functools

import jax
import jax.numpy as jnp
from jax.experimental import pallas as pl
from jax.experimental.pallas import tpu as pltpu

NEG_SLOPE = 0.2          # GATConv default negative_slope
NEG_INF = -1e30
_MIN_SPLIT = 256         # only split the dst axis across TensorCores above this node count


def _round_up(n, m):
    return ((n + m - 1) // m) * m


def _tpu_config():
    """Per-generation tiling / VMEM-limit / softmax-dtype choices."""
    try:
        kind = jax.devices()[0].device_kind.lower()
    except Exception:
        kind = ""
    if "v5" in kind:
        # v5e/v5p: 128 MiB VMEM, no bf16 VPU/EUP -> keep softmax math in f32.
        return dict(tile=512, vmem=96 * 1024 * 1024, softmax_bf16=False, two_tc=False)
    if "v6" in kind:
        # v6e: 128 MiB VMEM, bf16 EUP -> bf16 exp, big dst tiles.
        return dict(tile=512, vmem=96 * 1024 * 1024, softmax_bf16=True, two_tc=False)
    if "7" in kind:
        # v7x: 64 MiB VMEM per TC, 2 TCs -> smaller dst tile, >=2 tiles, VMEM headroom.
        return dict(tile=128, vmem=48 * 1024 * 1024, softmax_bf16=True, two_tc=True)
    # Unknown generation: conservative defaults that run everywhere.
    return dict(tile=256, vmem=48 * 1024 * 1024, softmax_bf16=False, two_tc=False)


def _supports_single_buffer():
    if not hasattr(pl, "Buffered"):
        return False
    try:
        pl.BlockSpec((8, 128), lambda i: (0, 0), pipeline_mode=pl.Buffered(1))
        return True
    except Exception:
        return False


_SINGLE_BUFFER = _supports_single_buffer()


def _resident_spec(shape):
    """Spec for operands whose block never changes across the grid: single-buffer them so the
    default double buffer does not waste VMEM (buys back room for larger adj tiles)."""
    if _SINGLE_BUFFER:
        return pl.BlockSpec(shape, lambda i: (0, 0), pipeline_mode=pl.Buffered(1))
    return pl.BlockSpec(shape, lambda i: (0, 0))


# ----------------------------------------------------------------------------- kernels


def proj_kernel(x_ref, w_ref, attbd_ref, h_ref, alpha_ref):
    """h = x @ W (bf16-in / f32-acc) and alpha = h @ att_blockdiag, per node tile."""
    h = jnp.dot(x_ref[...], w_ref[...], preferred_element_type=jnp.float32)       # [TN, H*C] f32
    alpha_ref[...] = jnp.dot(h.astype(jnp.bfloat16), attbd_ref[...],
                             preferred_element_type=jnp.float32)                  # [TN, 2H]  f32
    h_ref[...] = h.astype(jnp.bfloat16)


def attn_kernel(adj_ref, adst_ref, rowmax_ref, asrcT_ref, h_ref, bias_ref, out_ref,
                *, heads, out_ch, apply_relu, softmax_bf16):
    # adj_ref:    [TILE_D, N_src] int8   (1 where edge src->dst, incl. self loops)
    # adst_ref:   [TILE_D, heads] f32    per-head a_dst for this dst tile
    # rowmax_ref: [TILE_D, heads] f32    hoisted upper bound on the per-row softmax max
    # asrcT_ref:  [heads, N_src]  f32    per-head a_src, pre-transposed once per layer
    # h_ref:      [N_src, heads*out_ch] bf16
    # bias_ref:   [1, heads*out_ch] f32
    # out_ref:    [TILE_D, heads*out_ch] (bf16 intermediate layers / f32 final layer)
    mask = adj_ref[...] != 0                                    # bool; no int8->f32 cast pass
    outs = []
    for hd in range(heads):                                     # heads is small (1-8): unrolled
        e = adst_ref[:, hd:hd + 1] + asrcT_ref[hd:hd + 1, :]    # [TD, Ns] f32
        e = jnp.where(e > 0, e, NEG_SLOPE * e)                  # leaky_relu
        e = e - rowmax_ref[:, hd:hd + 1]                        # hoisted max: no in-kernel reduce
        e = jnp.where(mask, e, NEG_INF)                         # masked entries -> exp == 0
        if softmax_bf16:
            p = jnp.exp(e.astype(jnp.bfloat16))                              # bf16 EUP (v6e/v7x)
            denom = jnp.sum(p, axis=1, keepdims=True, dtype=jnp.float32)
        else:
            pf = jnp.exp(e)                                                  # f32 (v5e / default)
            denom = jnp.sum(pf, axis=1, keepdims=True)
            p = pf.astype(jnp.bfloat16)
        # Guard: a fully-underflowed row (pathologically scaled inputs) stays finite.
        inv = pl.reciprocal(jnp.maximum(denom, 1e-30), approx=True)          # EUP slot
        hh = h_ref[:, hd * out_ch:(hd + 1) * out_ch]                         # [Ns, C] bf16
        o = jnp.dot(p, hh, preferred_element_type=jnp.float32)               # [TD, C] f32
        outs.append(o * inv)                                                 # scale small output
    out = outs[0] if heads == 1 else jnp.concatenate(outs, axis=-1)
    out = out + bias_ref[...]
    if apply_relu:
        out = jnp.maximum(out, 0.0)
    out_ref[...] = out.astype(out_ref.dtype)                    # one lane-dense [TD, H*C] store


# ----------------------------------------------------------------------------- wrappers


def _build_att_blockdiag(att_src, att_dst, heads, out_ch):
    """[heads*out_ch, 2*heads] block-diagonal matrix so alpha = h @ bd gives
    alpha[:, :heads] = a_src per head, alpha[:, heads:] = a_dst per head."""
    bd = jnp.zeros((heads * out_ch, 2 * heads), jnp.float32)
    for hd in range(heads):
        bd = bd.at[hd * out_ch:(hd + 1) * out_ch, hd].set(att_src[:, hd])
        bd = bd.at[hd * out_ch:(hd + 1) * out_ch, heads + hd].set(att_dst[:, hd])
    return bd


def gat_layer(x_bf16, W, att_src, att_dst, bias, adj_i8, *, heads, out_ch,
              apply_relu, tile_d, vmem_limit, softmax_bf16):
    N_pad, F_in = x_bf16.shape
    HC = heads * out_ch
    n_tiles = N_pad // tile_d

    W_bf = W.astype(jnp.bfloat16)
    att_bd = _build_att_blockdiag(att_src, att_dst, heads, out_ch).astype(jnp.bfloat16)

    cparams = pltpu.CompilerParams(
        dimension_semantics=("parallel",),
        vmem_limit_bytes=vmem_limit)

    # 1) projection + fused attention coefficients, tiled over nodes
    h, alpha = pl.pallas_call(
        proj_kernel,
        out_shape=(jax.ShapeDtypeStruct((N_pad, HC), jnp.bfloat16),
                   jax.ShapeDtypeStruct((N_pad, 2 * heads), jnp.float32)),
        grid=(n_tiles,),
        in_specs=[pl.BlockSpec((tile_d, F_in), lambda i: (i, 0)),
                  _resident_spec((F_in, HC)),
                  _resident_spec((HC, 2 * heads))],
        out_specs=(pl.BlockSpec((tile_d, HC), lambda i: (i, 0)),
                   pl.BlockSpec((tile_d, 2 * heads), lambda i: (i, 0))),
        compiler_params=cparams,
    )(x_bf16, W_bf, att_bd)

    alpha_src = alpha[:, :heads]                      # [N_pad, H]
    alpha_dst = alpha[:, heads:]                      # [N_pad, H]
    alpha_src_T = jnp.transpose(alpha_src)            # [H, N_pad]   (tiny; once per layer)
    # Hoisted softmax max: m[d,h] = leaky_relu(a_dst[d,h] + max_s a_src[h,s]) upper-bounds every
    # unmasked row entry (leaky_relu is monotone), so the kernel needs no per-row max reduce.
    a_src_max = jnp.max(alpha_src, axis=0, keepdims=True)          # [1, H]
    t = alpha_dst + a_src_max
    row_max = jnp.where(t > 0, t, NEG_SLOPE * t)                   # [N_pad, H]

    out_dtype = jnp.bfloat16 if apply_relu else jnp.float32        # bf16 between layers, f32 final
    kernel = functools.partial(attn_kernel, heads=heads, out_ch=out_ch,
                               apply_relu=apply_relu, softmax_bf16=softmax_bf16)
    out = pl.pallas_call(
        kernel,
        out_shape=jax.ShapeDtypeStruct((N_pad, HC), out_dtype),
        grid=(n_tiles,),
        in_specs=[pl.BlockSpec((tile_d, N_pad), lambda i: (i, 0)),   # adj tile (int8, streamed)
                  pl.BlockSpec((tile_d, heads), lambda i: (i, 0)),   # a_dst tile
                  pl.BlockSpec((tile_d, heads), lambda i: (i, 0)),   # hoisted row-max tile
                  _resident_spec((heads, N_pad)),                    # a_src^T (resident)
                  _resident_spec((N_pad, HC)),                       # h (resident, bf16)
                  _resident_spec((1, HC))],                          # bias
        out_specs=pl.BlockSpec((tile_d, HC), lambda i: (i, 0)),
        compiler_params=cparams,
    )(adj_i8, alpha_dst, row_max, alpha_src_T, h, bias)
    return out


def init_gat_params(key, in_feature, hidden, out_feature, gat_heads, gatnum):
    """Deterministic (seeded) glorot-style init matching GATConv parameter shapes."""
    layer_cfgs = [(in_feature, hidden, gat_heads)]                     # first
    for _ in range(gatnum - 2):
        layer_cfgs.append((hidden * gat_heads, hidden, gat_heads))     # middle
    layer_cfgs.append((hidden * gat_heads, out_feature, 1))            # last (concat=False, heads=1)

    params = []
    for (f_in, c_out, heads) in layer_cfgs:
        key, k1, k2, k3 = jax.random.split(key, 4)
        scale_w = (6.0 / (f_in + heads * c_out)) ** 0.5
        W = jax.random.uniform(k1, (f_in, heads * c_out), jnp.float32,
                               minval=-scale_w, maxval=scale_w)
        scale_a = (6.0 / (c_out + 1)) ** 0.5
        att_src = jax.random.uniform(k2, (c_out, heads), jnp.float32,
                                     minval=-scale_a, maxval=scale_a)
        att_dst = jax.random.uniform(k3, (c_out, heads), jnp.float32,
                                     minval=-scale_a, maxval=scale_a)
        bias = jnp.zeros((1, heads * c_out), jnp.float32)
        params.append(dict(W=W, att_src=att_src, att_dst=att_dst, bias=bias,
                           heads=heads, out_ch=c_out))
    return params


def _choose_tile(n, cfg_tile, two_tc):
    if n <= cfg_tile:
        if two_tc and n >= 2 * _MIN_SPLIT:
            return _round_up((n + 1) // 2, 32)   # >=2 dst tiles so both v7x TensorCores get work
        return _round_up(n, 32)                  # single tile for small graphs
    return cfg_tile


def gat_lpa_forward(x, adj, params):
    """adj[dst, src] = 1 for edge src->dst (self-loops included)."""
    cfg = _tpu_config()
    N = x.shape[0]
    tile = _choose_tile(N, cfg["tile"], cfg["two_tc"])
    N_pad = _round_up(N, tile)
    if N_pad != N:
        x = jnp.pad(x, ((0, N_pad - N), (0, 0)))
        adj = jnp.pad(adj, ((0, N_pad - N), (0, N_pad - N)))
    adj_i8 = (adj > 0).astype(jnp.int8)          # 4x smaller DMA/VMEM footprint than f32

    h = x.astype(jnp.bfloat16)                   # bf16 activations at every layer boundary
    n_layers = len(params)
    for i, p in enumerate(params):
        apply_relu = i < n_layers - 1            # relu + (eval-mode) dropout after all but last
        h = gat_layer(h, p["W"], p["att_src"], p["att_dst"], p["bias"], adj_i8,
                      heads=p["heads"], out_ch=p["out_ch"], apply_relu=apply_relu,
                      tile_d=tile, vmem_limit=cfg["vmem"], softmax_bf16=cfg["softmax_bf16"])
    return h[:N]


if __name__ == "__main__":
    # Small synthetic problem consistent with GAT_LPA.__init__
    N = 16               # number of nodes
    in_feature = 8
    hidden = 16
    out_feature = 4
    gat_heads = 2
    gatnum = 3
    num_edges = 40

    key = jax.random.PRNGKey(0)
    k_x, k_src, k_dst, k_param = jax.random.split(key, 4)

    x = jax.random.normal(k_x, (N, in_feature), jnp.float32)
    src = jax.random.randint(k_src, (num_edges,), 0, N)
    dst = jax.random.randint(k_dst, (num_edges,), 0, N)
    edge_index = jnp.stack([src, dst], axis=0)          # [2, num_edges], like PyG

    # Dense adjacency mask adj[dst, src] = 1, plus self-loops (GATConv add_self_loops=True).
    adj = jnp.zeros((N, N), jnp.float32).at[edge_index[1], edge_index[0]].set(1.0)
    adj = jnp.maximum(adj, jnp.eye(N, dtype=jnp.float32))

    params = init_gat_params(k_param, in_feature, hidden, out_feature, gat_heads, gatnum)

    out = gat_lpa_forward(x, adj, params)
    out = jax.block_until_ready(out)

    assert out.shape == (N, out_feature), out.shape
    assert bool(jnp.all(jnp.isfinite(out)))
    print("KERNEL_OK")
</pallas_src>

<mosaic_0001>
module attributes {stable_mosaic.version = 11 : i64} {
  func.func @proj_kernel(%arg0: i32, %arg1: memref<32x8xbf16, #tpu.memory_space<vmem>>, %arg2: memref<8x32xbf16, #tpu.memory_space<vmem>>, %arg3: memref<32x4xbf16, #tpu.memory_space<vmem>>, %arg4: memref<32x32xbf16, #tpu.memory_space<vmem>>, %arg5: memref<32x4xf32, #tpu.memory_space<vmem>>) attributes {dimension_semantics = [#tpu.dimension_semantics<parallel>], iteration_bounds = array<i64: 1>, scalar_prefetch = 0 : i64, scratch_operands = 0 : i64, tpu.core_type = #tpu.core_type<tc>, window_params = [{transform_indices = @transform_0, window_bounds = array<i64: 32, 8>}, {pipeline_mode = #tpu.pipeline_mode<synchronous>, transform_indices = @transform_1, window_bounds = array<i64: 8, 32>}, {pipeline_mode = #tpu.pipeline_mode<synchronous>, transform_indices = @transform_2, window_bounds = array<i64: 32, 4>}, {transform_indices = @transform_3, window_bounds = array<i64: 32, 32>}, {transform_indices = @transform_4, window_bounds = array<i64: 32, 4>}]} {
    %c0 = arith.constant 0 : index
    %c0_0 = arith.constant 0 : index
    %0 = vector.load %arg1[%c0, %c0_0] : memref<32x8xbf16, #tpu.memory_space<vmem>>, vector<32x8xbf16>
    %c0_1 = arith.constant 0 : index
    %c0_2 = arith.constant 0 : index
    %1 = vector.load %arg2[%c0_1, %c0_2] : memref<8x32xbf16, #tpu.memory_space<vmem>>, vector<8x32xbf16>
    %cst = arith.constant dense<0.000000e+00> : vector<32x32xf32>
    %2 = tpu.matmul %0, %1, %cst {dimension_numbers = #tpu.dot_dimension_numbers<[1], [0], [0], [1], [0, 0, 1, 1], [], []>} : vector<32x8xbf16>, vector<8x32xbf16>, vector<32x32xf32> -> vector<32x32xf32>
    %3 = arith.truncf %2 : vector<32x32xf32> to vector<32x32xbf16>
    %c0_3 = arith.constant 0 : index
    %c0_4 = arith.constant 0 : index
    %4 = vector.load %arg3[%c0_3, %c0_4] : memref<32x4xbf16, #tpu.memory_space<vmem>>, vector<32x4xbf16>
    %cst_5 = arith.constant dense<0.000000e+00> : vector<32x4xf32>
    %5 = tpu.matmul %3, %4, %cst_5 {dimension_numbers = #tpu.dot_dimension_numbers<[1], [0], [0], [1], [0, 0, 1, 1], [], []>} : vector<32x32xbf16>, vector<32x4xbf16>, vector<32x4xf32> -> vector<32x4xf32>
    %c0_6 = arith.constant 0 : index
    %c0_7 = arith.constant 0 : index
    %6 = vector.load %arg5[%c0_6, %c0_7] : memref<32x4xf32, #tpu.memory_space<vmem>>, vector<32x4xf32>
    tpu.vector_store %arg5[%c0_6, %c0_7], %5 {strides = array<i32>} : memref<32x4xf32, #tpu.memory_space<vmem>>, vector<32x4xf32>,
    %7 = arith.truncf %2 : vector<32x32xf32> to vector<32x32xbf16>
    %c0_8 = arith.constant 0 : index
    %c0_9 = arith.constant 0 : index
    %8 = vector.load %arg4[%c0_8, %c0_9] : memref<32x32xbf16, #tpu.memory_space<vmem>>, vector<32x32xbf16>
    tpu.vector_store %arg4[%c0_8, %c0_9], %7 {strides = array<i32>} : memref<32x32xbf16, #tpu.memory_space<vmem>>, vector<32x32xbf16>,
    return
  }
  func.func @transform_0(%arg0: i32) -> (i32, i32) {
    %c0_i32 = arith.constant 0 : i32
    %c0_i32_0 = arith.constant 0 : i32
    return %arg0, %c0_i32 : i32, i32
  }
  func.func @transform_1(%arg0: i32) -> (i32, i32) {
    %c0_i32 = arith.constant 0 : i32
    %c0_i32_0 = arith.constant 0 : i32
    %c0_i32_1 = arith.constant 0 : i32
    return %c0_i32, %c0_i32_0 : i32, i32
  }
  func.func @transform_2(%arg0: i32) -> (i32, i32) {
    %c0_i32 = arith.constant 0 : i32
    %c0_i32_0 = arith.constant 0 : i32
    %c0_i32_1 = arith.constant 0 : i32
    return %c0_i32, %c0_i32_0 : i32, i32
  }
  func.func @transform_3(%arg0: i32) -> (i32, i32) {
    %c0_i32 = arith.constant 0 : i32
    %c0_i32_0 = arith.constant 0 : i32
    return %arg0, %c0_i32 : i32, i32
  }
  func.func @transform_4(%arg0: i32) -> (i32, i32) {
    %c0_i32 = arith.constant 0 : i32
    %c0_i32_0 = arith.constant 0 : i32
    return %arg0, %c0_i32 : i32, i32
  }
}

</mosaic_0001>

<bundles_post_ra>
// kernel: tpu_custom_call.1
= control target key start
LH: loop header
LB: loop body
LE: loop exit
PB: predicated region body
PF: predicated region fallthrough
CT: control target
= control target key end

     0   :  { %vm40_vm0 = vcmask 1043456   ;;  %vm33_vm1 = vcmask 64512   ;;  %s336_s0 = inlined_call_operand.vmem [shape: bf16[32,8], index: 0, kind: input, shape index: {}]   ;;  %s337_s1 = inlined_call_operand.vmem [shape: bf16[8,32], index: 1, kind: input, shape index: {}]   ;;  %s338_s2 = inlined_call_operand.vmem [shape: bf16[32,4], index: 2, kind: input, shape index: {}]   ;;  %s339_s3 = inlined_call_operand.hbm [shape: bf16[32,32], index: 3, kind: output, shape index: {0}]   ;;  %s340_s4 = inlined_call_operand.vmem [shape: f32[32,4], index: 4, kind: output, shape index: {1}]  }
   0x1   :  { %v22_v0 = vld [vmem:[%s337_s1] sm:$0xf]  ;;  %v253_v3 = vld [vmem:[%s336_s0 + $0x8] sm:$0xff]  }
   0x2   :  { %v252_v1 = vld [vmem:[%s336_s0] sm:$0xff]   ;;  %248 = vmatprep.subr.msk.bf16.mxu0 %vm40_vm0, %v22_v0  ;;  %v42_v2 = vsel %vm40_vm0, %v22_v0, 0 }
   0x3   :  { %235 = vmatpush3.bf16.msra.mxu0 %v42_v2  ;;  %236 = vmatprep.mubr.msk.bf16.mxu0 %vm33_vm1, %v252_v1 }
   0x4   :  { %10 = vsyncpa [#allocation3], 0  ;;  %v254_v4 = vld [vmem:[%s338_s2 + $0x8] sm:$0xff]   ;;  %v255_v5 = vld [vmem:[%s338_s2] sm:$0xff]   ;;  %vm186_vm2 = vcmask 257024   ;;  %vm111_vm3 = vcmask 261120  }
   0x5   :  { %240 = vmatprep.subr.bf16.mxu1 %v254_v4  ;;  %s278_s0 = smov [#allocation2]  }
   0x6   :  { %237 = vmatmul.mubr.msk.bf16.vlgmr.msra.gmra.mxu0 %vm33_vm1, %v253_v3  ;;  %241 = vmatpush3.bf16.msra.mxu1 %v254_v4  ;;  %s196_s2 = sshll.u32 %s278_s0, 4  ;;  %s197_s2 = int_to_ptr.vmem [resolvable:$true] %s196_s2 }
   0x7   :  { %242 = vmatprep.subr.bf16.mxu1 %v255_v5  ;;  %s256_s24 = scalar_lea.vmem %s197_s2, 256  ;;  %p261_p1 = scmp.lt.s32.totalorder %s197_s2, %s197_s2 }
   0x8   :  { %p257_p0 = scmp.ne.s32.totalorder %s197_s2, %s256_s24  ;;  %p262_p2 = scmp.lt.s32.totalorder %s256_s24, %s256_s24 }
   0xa   :  { %243 = vmatpush3.bf16.msra.mxu1 %v255_v5  ;;  %p263_p3 = por %p262_p2, %p261_p1 }
   0xc   :  { %p264_p4 = pnand %p263_p3, %p257_p0 }
  0xc6   :  { %v238_v6 = vpop.f32.mrf.mxu0 }
  0xc7   :  { %v225_v7 = vpack.c.bf16 %v238_v6, %v238_v6 }
  0xc8   :  { %v78_v8 = vpop.f32.mrf.mxu0 }
  0xc9   :  { %189 = vst.msk [vmem:[#allocation2 + $0x8] sm:$0xf] %vm186_vm2, %v225_v7  ;;  %v223_v9 = vpack.c.bf16 %v78_v8, %v78_v8 }
  0xca   :  { %v239_v10 = vpop.f32.mrf.mxu0 }
  0xcb   :  { %187 = vst.msk [vmem:[#allocation2] sm:$0xf] %vm186_vm2, %v223_v9  ;;  %v226_v11 = vpack.c.bf16 %v239_v10, %v239_v10  ;;  %v94_v15 = vpack.c.bf16 %v239_v10, %v238_v6 }
  0xcc   :  { %v81_v12 = vpop.f32.mrf.mxu0 }
  0xcd   :  { %190 = vst.msk [vmem:[#allocation2 + $0xc] sm:$0xf] %vm186_vm2, %v226_v11  ;;  %v93_v13 = vpack.c.bf16 %v81_v12, %v78_v8  ;;  %v224_v14 = vpack.c.bf16 %v81_v12, %v81_v12 }
  0xcf   :  { %188 = vst.msk [vmem:[#allocation2 + $0x4] sm:$0xf] %vm186_vm2, %v224_v14  ;;  %244 = vmatprep.mubr.msk.bf16.mxu1 %vm111_vm3, %v93_v13 }
  0xd0   :  { %245 = vmatmul.mubr.msk.bf16.vlgmr.msra.gmra.mxu1 %vm111_vm3, %v94_v15 }
  0xd1   :  { %267 = shalt.err (!%p264_p4)
}
  0xd2   :  { %s279_s25 = smov 64   ;;  %s280_s26 = smov 4   ;;  %vm167_vm4 = vcmask 31744  }
  0xd3   :  { %202 = dma.vmem_to_hbm [thread:$0]  %s197_s2, 256, %s339_s3, [#allocation3], %s279_s25, %s279_s25, %s280_s26  }
 0x190   :  { %v246_v16 = vpop.f32.mrf.mxu1 }
 0x191   :  { %170 = vst.msk [vmem:[%s340_s4 + $0x10] sm:$0xff] %vm167_vm4, %v246_v16 }
 0x192   :  { %v152_v17 = vpop.f32.mrf.mxu1 }
 0x193   :  { %168 = vst.msk [vmem:[%s340_s4] sm:$0xff] %vm167_vm4, %v152_v17 }
 0x194   :  { %v247_v18 = vpop.f32.mrf.mxu1 }
 0x195   :  { %171 = vst.msk [vmem:[%s340_s4 + $0x18] sm:$0xff] %vm167_vm4, %v247_v18 }
 0x196   :  { %v155_v19 = vpop.f32.mrf.mxu1 }
 0x197   :  { %169 = vst.msk [vmem:[%s340_s4 + $0x8] sm:$0xff] %vm167_vm4, %v155_v19 }
 0x198   :  { %276 = dma.done.wait [#allocation3], 256  }
 0x199   :  { %277 = vsyncadd [#allocation3], 4294967040 }
 0x19a   :  { %210 = vsyncpa [#allocation3], 1 }

</bundles_post_ra>
